<compile_context>
chip_gen: v5e
topology: v5e:2x2
jax: 0.10.0
libtpu: 0.0.40
codegen_flags: <defaults>
</compile_context>

<pallas_src>
import functools
import math

import jax
import jax.numpy as jnp
from jax.experimental import pallas as pl
from jax.experimental.pallas import tpu as pltpu

LANE = 128
SUBLANE = 8
NEG_INF = -1e30


def _pad_to(n, m):
    return ((n + m - 1) // m) * m


def _fused_actor_critic_kernel(obs_ref, wf_ref, bf_ref, wa_ref, ba_ref,
                               wv_ref, bv_ref, gum_ref,
                               v_ref, logp_ref, act_ref):
    # feature net: phi = relu(obs @ Wf + bf) -- kept in vregs, f32
    phi = jnp.maximum(
        jnp.dot(obs_ref[...], wf_ref[...], preferred_element_type=jnp.float32)
        + bf_ref[...],
        0.0,
    )

    # critic head: v = phi @ Wv + bv  (padded output columns are exactly 0)
    v = jnp.dot(phi, wv_ref[...], preferred_element_type=jnp.float32) + bv_ref[...]
    v_ref[...] = v.astype(v_ref.dtype)

    # actor head: logits; padded action columns sit at ~-1e30 via bias padding
    logits = jnp.dot(phi, wa_ref[...], preferred_element_type=jnp.float32) + ba_ref[...]

    # stable log-softmax (Categorical log-probabilities); padded columns'
    # exp underflows to 0 so the normalizer matches the unpadded softmax.
    m = jnp.max(logits, axis=-1, keepdims=True)
    lse = m + jnp.log(jnp.sum(jnp.exp(logits - m), axis=-1, keepdims=True))
    logp_ref[...] = (logits - lse).astype(logp_ref.dtype)

    # Categorical sample via Gumbel-max on the same logits (first-max index)
    pert = logits + gum_ref[...]
    idx = jax.lax.broadcasted_iota(jnp.int32, pert.shape, 1)
    pmax = jnp.max(pert, axis=-1, keepdims=True)
    action = jnp.min(
        jnp.where(pert == pmax, idx, jnp.int32(pert.shape[-1])),
        axis=-1, keepdims=True,
    )
    act_ref[...] = jnp.broadcast_to(action, act_ref.shape)


def _fused_call(obs_p, wf, bf, wa, ba, wv, bv, gum_p):
    bp = obs_p.shape[0]
    op, hp = wf.shape
    ap = wa.shape[1]
    vp = wv.shape[1]

    vmem_spec = pl.BlockSpec(memory_space=pltpu.MemorySpace.VMEM)
    inputs = (obs_p, wf, bf, wa, ba, wv, bv, gum_p)

    flops = 2 * bp * (op * hp + hp * (ap + vp))
    in_bytes = sum(int(a.size) * a.dtype.itemsize for a in inputs)
    out_bytes = bp * (vp * 4 + ap * 4 + LANE * 4)

    return pl.pallas_call(
        _fused_actor_critic_kernel,
        out_shape=(
            jax.ShapeDtypeStruct((bp, vp), jnp.float32),    # padded value
            jax.ShapeDtypeStruct((bp, ap), jnp.float32),    # full log-softmax
            jax.ShapeDtypeStruct((bp, LANE), jnp.int32),    # sampled action
        ),
        in_specs=[vmem_spec] * len(inputs),
        out_specs=(vmem_spec, vmem_spec, vmem_spec),
        cost_estimate=pl.CostEstimate(
            flops=int(flops),
            transcendentals=int(bp * ap),
            bytes_accessed=int(in_bytes + out_bytes),
        ),
    )(*inputs)


@functools.partial(jax.jit, static_argnames=("dims",))
def _forward_jit(padded, obs, key, action, dims):
    wf, bf, wa, ba, wv, bv = padded
    obs_dim, _hidden, n_actions = dims
    B = obs.shape[0]
    bp = max(_pad_to(B, SUBLANE), SUBLANE)
    op = wf.shape[0]
    ap = wa.shape[1]

    # pad observations / gumbel noise to sublane- and lane-aligned blocks
    obs_p = jnp.zeros((bp, op), jnp.float32).at[:B, :obs_dim].set(obs)
    gum = jax.random.gumbel(key, (B, n_actions), jnp.float32)
    gum_p = jnp.zeros((bp, ap), jnp.float32).at[:B, :n_actions].set(gum)

    v_p, logp_p, act_p = _fused_call(obs_p, wf, bf, wa, ba, wv, bv, gum_p)

    v = v_p[:B, 0]
    logp_full = logp_p[:B, :n_actions]
    if action is None:
        action = act_p[:B, 0]
    action = action.astype(jnp.int32)
    log_prob = jnp.take_along_axis(logp_full, action[:, None], axis=-1)[:, 0]
    return {"action": action, "log_prob": log_prob, "v": v}


def actor_critic_forward(params, obs, key, action=None):
    """Mirrors ActorCriticNet.forward: returns {'action', 'log_prob', 'v'}."""
    padded, dims = params
    return _forward_jit(padded, obs, key, action, dims=dims)


def init_params(key, obs_dim, hidden, n_actions, dtype=jnp.float32):
    """PyTorch nn.Linear-style init, stored pre-padded to lane-dense shapes."""
    op = _pad_to(obs_dim, LANE)
    hp = _pad_to(hidden, LANE)
    ap = _pad_to(n_actions, LANE)
    vp = LANE  # critic output (1) padded to a full lane width

    kf_w, kf_b, ka_w, ka_b, kv_w, kv_b = jax.random.split(key, 6)

    def linear(kw, kb, fin, fout, fin_p, fout_p, pad_bias=0.0):
        bound = 1.0 / math.sqrt(fin)
        w = jax.random.uniform(kw, (fin, fout), dtype, -bound, bound)
        b = jax.random.uniform(kb, (fout,), dtype, -bound, bound)
        w_p = jnp.zeros((fin_p, fout_p), dtype).at[:fin, :fout].set(w)
        b_p = jnp.full((1, fout_p), pad_bias, dtype).at[0, :fout].set(b)
        return w_p, b_p

    wf, bf = linear(kf_w, kf_b, obs_dim, hidden, op, hp)
    # padded actor-bias entries = -1e30 so padded action columns are inert
    wa, ba = linear(ka_w, ka_b, hidden, n_actions, hp, ap, pad_bias=NEG_INF)
    wv, bv = linear(kv_w, kv_b, hidden, 1, hp, vp)

    dims = (obs_dim, hidden, n_actions)
    return (wf, bf, wa, ba, wv, bv), dims


if __name__ == "__main__":
    key = jax.random.PRNGKey(0)
    kx, kp, ks = jax.random.split(key, 3)

    B, OBS, HID, ACT = 4, 24, 64, 6
    obs = jax.random.normal(kx, (B, OBS), jnp.float32)
    params = init_params(kp, OBS, HID, ACT)

    out = actor_critic_forward(params, obs, ks, action=None)
    out = jax.block_until_ready(out)

    # ---- pure-JAX reference of the same composition -------------------------
    (wf, bf, wa, ba, wv, bv), _ = params
    wf_r, bf_r = wf[:OBS, :HID], bf[0, :HID]
    wa_r, ba_r = wa[:HID, :ACT], ba[0, :ACT]
    wv_r, bv_r = wv[:HID, :1], bv[0, :1]

    phi = jnp.maximum(obs @ wf_r + bf_r, 0.0)
    v_ref = (phi @ wv_r + bv_r)[:, 0]
    logits = phi @ wa_r + ba_r
    m = jnp.max(logits, axis=-1, keepdims=True)
    logp_ref = logits - (m + jnp.log(jnp.sum(jnp.exp(logits - m), axis=-1,
                                             keepdims=True)))
    gum = jax.random.gumbel(ks, (B, ACT), jnp.float32)
    act_ref = jnp.argmax(logits + gum, axis=-1).astype(jnp.int32)
    lp_ref = jnp.take_along_axis(logp_ref, act_ref[:, None], axis=-1)[:, 0]

    assert out["v"].shape == (B,)
    assert out["action"].shape == (B,)
    assert out["log_prob"].shape == (B,)
    assert jnp.array_equal(out["action"], act_ref)
    assert jnp.allclose(out["v"], v_ref, atol=1e-4, rtol=1e-4)
    assert jnp.allclose(out["log_prob"], lp_ref, atol=1e-4, rtol=1e-4)

    print("KERNEL_OK")
</pallas_src>

<mosaic_0001>
module attributes {stable_mosaic.version = 11 : i64} {
  func.func @_fused_actor_critic_kernel(%arg0: memref<8x128xf32, #tpu.memory_space<vmem>>, %arg1: memref<128x128xf32, #tpu.memory_space<vmem>>, %arg2: memref<1x128xf32, #tpu.memory_space<vmem>>, %arg3: memref<128x128xf32, #tpu.memory_space<vmem>>, %arg4: memref<1x128xf32, #tpu.memory_space<vmem>>, %arg5: memref<128x128xf32, #tpu.memory_space<vmem>>, %arg6: memref<1x128xf32, #tpu.memory_space<vmem>>, %arg7: memref<8x128xf32, #tpu.memory_space<vmem>>, %arg8: memref<8x128xf32, #tpu.memory_space<vmem>>, %arg9: memref<8x128xf32, #tpu.memory_space<vmem>>, %arg10: memref<8x128xi32, #tpu.memory_space<vmem>>) attributes {dimension_semantics = [], scalar_prefetch = 0 : i64, scratch_operands = 0 : i64, tpu.core_type = #tpu.core_type<tc>} {
    %c0 = arith.constant 0 : index
    %c0_0 = arith.constant 0 : index
    %0 = vector.load %arg0[%c0, %c0_0] : memref<8x128xf32, #tpu.memory_space<vmem>>, vector<8x128xf32>
    %c0_1 = arith.constant 0 : index
    %c0_2 = arith.constant 0 : index
    %1 = vector.load %arg1[%c0_1, %c0_2] : memref<128x128xf32, #tpu.memory_space<vmem>>, vector<128x128xf32>
    %cst = arith.constant dense<0.000000e+00> : vector<8x128xf32>
    %2 = tpu.matmul %0, %1, %cst {dimension_numbers = #tpu.dot_dimension_numbers<[1], [0], [0], [1], [0, 0, 1, 1], [], []>} : vector<8x128xf32>, vector<128x128xf32>, vector<8x128xf32> -> vector<8x128xf32>
    %c0_3 = arith.constant 0 : index
    %c0_4 = arith.constant 0 : index
    %3 = vector.load %arg2[%c0_3, %c0_4] : memref<1x128xf32, #tpu.memory_space<vmem>>, vector<1x128xf32>
    %4 = vector.broadcast %3 : vector<1x128xf32> to vector<8x128xf32>
    %5 = arith.addf %2, %4 : vector<8x128xf32>
    %cst_5 = arith.constant 0.000000e+00 : f32
    %6 = vector.broadcast %cst_5 : f32 to vector<8x128xf32>
    %7 = arith.maximumf %5, %6 : vector<8x128xf32>
    %c0_6 = arith.constant 0 : index
    %c0_7 = arith.constant 0 : index
    %8 = vector.load %arg5[%c0_6, %c0_7] : memref<128x128xf32, #tpu.memory_space<vmem>>, vector<128x128xf32>
    %cst_8 = arith.constant dense<0.000000e+00> : vector<8x128xf32>
    %9 = tpu.matmul %7, %8, %cst_8 {dimension_numbers = #tpu.dot_dimension_numbers<[1], [0], [0], [1], [0, 0, 1, 1], [], []>} : vector<8x128xf32>, vector<128x128xf32>, vector<8x128xf32> -> vector<8x128xf32>
    %c0_9 = arith.constant 0 : index
    %c0_10 = arith.constant 0 : index
    %10 = vector.load %arg6[%c0_9, %c0_10] : memref<1x128xf32, #tpu.memory_space<vmem>>, vector<1x128xf32>
    %11 = vector.broadcast %10 : vector<1x128xf32> to vector<8x128xf32>
    %12 = arith.addf %9, %11 : vector<8x128xf32>
    %c0_11 = arith.constant 0 : index
    %c0_12 = arith.constant 0 : index
    %13 = vector.load %arg8[%c0_11, %c0_12] : memref<8x128xf32, #tpu.memory_space<vmem>>, vector<8x128xf32>
    tpu.vector_store %arg8[%c0_11, %c0_12], %12 {strides = array<i32>} : memref<8x128xf32, #tpu.memory_space<vmem>>, vector<8x128xf32>,
    %c0_13 = arith.constant 0 : index
    %c0_14 = arith.constant 0 : index
    %14 = vector.load %arg3[%c0_13, %c0_14] : memref<128x128xf32, #tpu.memory_space<vmem>>, vector<128x128xf32>
    %cst_15 = arith.constant dense<0.000000e+00> : vector<8x128xf32>
    %15 = tpu.matmul %7, %14, %cst_15 {dimension_numbers = #tpu.dot_dimension_numbers<[1], [0], [0], [1], [0, 0, 1, 1], [], []>} : vector<8x128xf32>, vector<128x128xf32>, vector<8x128xf32> -> vector<8x128xf32>
    %c0_16 = arith.constant 0 : index
    %c0_17 = arith.constant 0 : index
    %16 = vector.load %arg4[%c0_16, %c0_17] : memref<1x128xf32, #tpu.memory_space<vmem>>, vector<1x128xf32>
    %17 = vector.broadcast %16 : vector<1x128xf32> to vector<8x128xf32>
    %18 = arith.addf %15, %17 : vector<8x128xf32>
    %cst_18 = arith.constant dense<0xFF800000> : vector<8xf32>
    %19 = vector.multi_reduction <maximumf>, %18, %cst_18 [1] : vector<8x128xf32> to vector<8xf32>
    %20 = vector.shape_cast %19 : vector<8xf32> to vector<8x1xf32>
    %21 = vector.broadcast %20 : vector<8x1xf32> to vector<8x128xf32>
    %22 = arith.subf %18, %21 : vector<8x128xf32>
    %23 = math.exp %22 : vector<8x128xf32>
    %cst_19 = arith.constant dense<0.000000e+00> : vector<8xf32>
    %24 = vector.multi_reduction <add>, %23, %cst_19 [1] : vector<8x128xf32> to vector<8xf32>
    %25 = vector.shape_cast %24 : vector<8xf32> to vector<8x1xf32>
    %26 = math.log %25 : vector<8x1xf32>
    %27 = arith.addf %20, %26 : vector<8x1xf32>
    %28 = vector.broadcast %27 : vector<8x1xf32> to vector<8x128xf32>
    %29 = arith.subf %18, %28 : vector<8x128xf32>
    %c0_20 = arith.constant 0 : index
    %c0_21 = arith.constant 0 : index
    %30 = vector.load %arg9[%c0_20, %c0_21] : memref<8x128xf32, #tpu.memory_space<vmem>>, vector<8x128xf32>
    tpu.vector_store %arg9[%c0_20, %c0_21], %29 {strides = array<i32>} : memref<8x128xf32, #tpu.memory_space<vmem>>, vector<8x128xf32>,
    %c0_22 = arith.constant 0 : index
    %c0_23 = arith.constant 0 : index
    %31 = vector.load %arg7[%c0_22, %c0_23] : memref<8x128xf32, #tpu.memory_space<vmem>>, vector<8x128xf32>
    %32 = arith.addf %18, %31 : vector<8x128xf32>
    %33 = tpu.iota {dimensions = array<i32: 1>} : vector<8x128xi32>
    %cst_24 = arith.constant dense<0xFF800000> : vector<8xf32>
    %34 = vector.multi_reduction <maximumf>, %32, %cst_24 [1] : vector<8x128xf32> to vector<8xf32>
    %35 = vector.shape_cast %34 : vector<8xf32> to vector<8x1xf32>
    %36 = vector.broadcast %35 : vector<8x1xf32> to vector<8x128xf32>
    %37 = arith.cmpf oeq, %32, %36 : vector<8x128xf32>
    %c128_i32 = arith.constant 128 : i32
    %38 = vector.broadcast %c128_i32 : i32 to vector<8x128xi32>
    %39 = arith.select %37, %33, %38 : vector<8x128xi1>, vector<8x128xi32>
    %cst_25 = arith.constant dense<2147483647> : vector<8xi32>
    %40 = vector.multi_reduction <minsi>, %39, %cst_25 [1] : vector<8x128xi32> to vector<8xi32>
    %41 = vector.shape_cast %40 : vector<8xi32> to vector<8x1xi32>
    %42 = vector.shape_cast %41 : vector<8x1xi32> to vector<8x1xi32>
    %43 = vector.broadcast %42 : vector<8x1xi32> to vector<8x128xi32>
    %c0_26 = arith.constant 0 : index
    %c0_27 = arith.constant 0 : index
    %44 = vector.load %arg10[%c0_26, %c0_27] : memref<8x128xi32, #tpu.memory_space<vmem>>, vector<8x128xi32>
    tpu.vector_store %arg10[%c0_26, %c0_27], %43 {strides = array<i32>} : memref<8x128xi32, #tpu.memory_space<vmem>>, vector<8x128xi32>,
    return
  }
}

</mosaic_0001>

<bundles_post_ra>
// kernel: _forward_jit.1
= control target key start
LH: loop header
LB: loop body
LE: loop exit
PB: predicated region body
PF: predicated region fallthrough
CT: control target
= control target key end

     0   :  { %16 = vsyncpa [#allocation3], 0  ;;  %s432_s0 = inlined_call_operand.vmem [shape: f32[8,128], index: 0, kind: input, shape index: {}]   ;;  %s433_s1 = inlined_call_operand.hbm [shape: f32[128,128], index: 1, kind: input, shape index: {}]   ;;  %s434_s2 = inlined_call_operand.vmem [shape: f32[1,128], index: 2, kind: input, shape index: {}]   ;;  %s435_s3 = inlined_call_operand.hbm [shape: f32[128,128], index: 3, kind: input, shape index: {}]   ;;  %s436_s4 = inlined_call_operand.vmem [shape: f32[1,128], index: 4, kind: input, shape index: {}]   ;;  %s437_s5 = inlined_call_operand.hbm [shape: f32[128,128], index: 5, kind: input, shape index: {}]   ;;  %s438_s6 = inlined_call_operand.vmem [shape: f32[1,128], index: 6, kind: input, shape index: {}]   ;;  %s439_s7 = inlined_call_operand.vmem [shape: f32[8,128], index: 7, kind: input, shape index: {}]   ;;  %s440_s8 = inlined_call_operand.vmem [shape: f32[8,128], index: 8, kind: output, shape index: {0}]   ;;  %s441_s9 = inlined_call_operand.vmem [shape: f32[8,128], index: 9, kind: output, shape index: {1}]   ;;  %s442_s10 = inlined_call_operand.vmem [shape: s32[8,128], index: 10, kind: output, shape index: {2}]  }
   0x1   :  { %17 = vsyncpa [#allocation5], 0  ;;  %s39_s15 = sshll.u32 %s435_s3, 4  ;;  %s339_s16 = smov [#allocation4]   ;;  %s40_s15 = int_to_ptr.hbm [resolvable:$true] %s39_s15 }
   0x2   :  { %s41_s17 = sshll.u32 %s339_s16, 4  ;;  %s24_s20 = sshll.u32 %s433_s1, 4  ;;  %s42_s17 = int_to_ptr.vmem [resolvable:$true] %s41_s17  ;;  %s25_s20 = int_to_ptr.hbm [resolvable:$true] %s24_s20 }
   0x3   :  { %s340_s21 = smov 128   ;;  %s341_s22 = smov 8  }
   0x4   :  { %47 = dma.hbm_to_vmem [thread:$0]  %s40_s15, 2048, %s42_s17, [#allocation5], %s340_s21, %s340_s21, %s341_s22  }
   0x5   :  { %s342_s23 = smov [#allocation2]   ;;  %s54_s27 = sshll.u32 %s437_s5, 4  ;;  %s55_s27 = int_to_ptr.hbm [resolvable:$true] %s54_s27 }
   0x6   :  { %s26_s24 = sshll.u32 %s342_s23, 4  ;;  %s343_s3 = smov [#allocation6]   ;;  %s27_s24 = int_to_ptr.vmem [resolvable:$true] %s26_s24 }
   0x7   :  { %32 = dma.hbm_to_vmem [thread:$0]  %s25_s20, 2048, %s27_s24, [#allocation3], %s340_s21, %s340_s21, %s341_s22  }
   0x8   :  { %s56_s28 = sshll.u32 %s343_s3, 4  ;;  %s57_s28 = int_to_ptr.vmem [resolvable:$true] %s56_s28 }
   0x9   :  { %62 = dma.hbm_to_vmem [thread:$0]  %s55_s27, 2048, %s57_s28, [#allocation5], %s340_s21, %s340_s21, %s341_s22  }
   0xa   :  { %335 = dma.done.wait [#allocation3], 2048  }
   0xb   :  { %336 = vsyncadd [#allocation3], 4294965248 }
   0xc   :  { %337 = dma.done.wait [#allocation5], 4096  }
   0xd   :  { %338 = vsyncadd [#allocation5], 4294963200  ;;  %v95_v0 = vld [vmem:[#allocation2 + $0x78] sm:$0xff]  ;;  %v94_v1 = vld [vmem:[#allocation2 + $0x70] sm:$0xff]  ;;  %v216_v61 = vlaneseq }
   0xe   :  { %100 = vmatpush.msra.mxu0 %v95_v0  ;;  %v93_v2 = vld [vmem:[#allocation2 + $0x68] sm:$0xff]  ;;  %v92_v3 = vld [vmem:[#allocation2 + $0x60] sm:$0xff]  ;;  %v91_v4 = vld [vmem:[#allocation2 + $0x58] sm:$0xff] }
   0xf   :  { %v136_v5 = vld [vmem:[#allocation6 + $0x78] sm:$0xff]  ;;  %v135_v7 = vld [vmem:[#allocation6 + $0x70] sm:$0xff]  ;;  %v134_v9 = vld [vmem:[#allocation6 + $0x68] sm:$0xff]  ;;  %v217_v62 = vand.u32 127, %v216_v61 }
  0x10   :  { %101 = vmatpush.msra.mxu0 %v94_v1  ;;  %141 = vmatpush.msra.mxu1 %v136_v5  ;;  %v177_v6 = vld [vmem:[#allocation4 + $0x78] sm:$0xff]  ;;  %v176_v8 = vld [vmem:[#allocation4 + $0x70] sm:$0xff]  ;;  %v175_v11 = vld [vmem:[#allocation4 + $0x68] sm:$0xff] }
  0x11   :  { %182 = vmatpush.msra.mxu2 %v177_v6  ;;  %v90_v10 = vld [vmem:[#allocation2 + $0x50] sm:$0xff]  ;;  %v133_v12 = vld [vmem:[#allocation6 + $0x60] sm:$0xff]  ;;  %v89_v13 = vld [vmem:[#allocation2 + $0x48] sm:$0xff] }
  0x12   :  { %102 = vmatpush.msra.mxu0 %v93_v2  ;;  %142 = vmatpush.msra.mxu1 %v135_v7  ;;  %v174_v14 = vld [vmem:[#allocation4 + $0x60] sm:$0xff]  ;;  %v132_v15 = vld [vmem:[#allocation6 + $0x58] sm:$0xff]  ;;  %v131_v18 = vld [vmem:[#allocation6 + $0x50] sm:$0xff] }
  0x13   :  { %183 = vmatpush.msra.mxu2 %v176_v8  ;;  %v88_v16 = vld [vmem:[#allocation2 + $0x40] sm:$0xff]  ;;  %v173_v17 = vld [vmem:[#allocation4 + $0x58] sm:$0xff]  ;;  %v172_v20 = vld [vmem:[#allocation4 + $0x50] sm:$0xff] }
  0x14   :  { %103 = vmatpush.msra.mxu0 %v92_v3  ;;  %143 = vmatpush.msra.mxu1 %v134_v9  ;;  %v87_v19 = vld [vmem:[#allocation2 + $0x38] sm:$0xff]  ;;  %v130_v21 = vld [vmem:[#allocation6 + $0x48] sm:$0xff]  ;;  %v86_v22 = vld [vmem:[#allocation2 + $0x30] sm:$0xff] }
  0x15   :  { %184 = vmatpush.msra.mxu2 %v175_v11  ;;  %v171_v23 = vld [vmem:[#allocation4 + $0x48] sm:$0xff]  ;;  %v129_v24 = vld [vmem:[#allocation6 + $0x40] sm:$0xff]  ;;  %v128_v27 = vld [vmem:[#allocation6 + $0x38] sm:$0xff] }
  0x16   :  { %104 = vmatpush.msra.mxu0 %v91_v4  ;;  %144 = vmatpush.msra.mxu1 %v133_v12  ;;  %v85_v25 = vld [vmem:[#allocation2 + $0x28] sm:$0xff]  ;;  %v170_v26 = vld [vmem:[#allocation4 + $0x40] sm:$0xff]  ;;  %v169_v29 = vld [vmem:[#allocation4 + $0x38] sm:$0xff] }
  0x17   :  { %185 = vmatpush.msra.mxu2 %v174_v14  ;;  %v84_v28 = vld [vmem:[#allocation2 + $0x20] sm:$0xff]  ;;  %v127_v30 = vld [vmem:[#allocation6 + $0x30] sm:$0xff]  ;;  %v83_v31 = vld [vmem:[#allocation2 + $0x18] sm:$0xff] }
  0x18   :  { %105 = vmatpush.msra.mxu0 %v90_v10  ;;  %145 = vmatpush.msra.mxu1 %v132_v15  ;;  %v168_v32 = vld [vmem:[#allocation4 + $0x30] sm:$0xff]  ;;  %v126_v33 = vld [vmem:[#allocation6 + $0x28] sm:$0xff]  ;;  %v125_v36 = vld [vmem:[#allocation6 + $0x20] sm:$0xff] }
  0x19   :  { %186 = vmatpush.msra.mxu2 %v173_v17  ;;  %v82_v34 = vld [vmem:[#allocation2 + $0x10] sm:$0xff]  ;;  %v167_v35 = vld [vmem:[#allocation4 + $0x28] sm:$0xff]  ;;  %v166_v38 = vld [vmem:[#allocation4 + $0x20] sm:$0xff] }
  0x1a   :  { %106 = vmatpush.msra.mxu0 %v89_v13  ;;  %146 = vmatpush.msra.mxu1 %v131_v18  ;;  %v81_v37 = vld [vmem:[#allocation2 + $0x8] sm:$0xff]  ;;  %v124_v39 = vld [vmem:[#allocation6 + $0x18] sm:$0xff]  ;;  %v80_v40 = vld [vmem:[#allocation2] sm:$0xff] }
  0x1b   :  { %187 = vmatpush.msra.mxu2 %v172_v20  ;;  %v165_v41 = vld [vmem:[#allocation4 + $0x18] sm:$0xff]  ;;  %v79_v42 = vld [vmem:[%s432_s0] sm:$0xff]  ;;  %v123_v43 = vld [vmem:[#allocation6 + $0x10] sm:$0xff] }
  0x1c   :  { %107 = vmatpush.msra.mxu0 %v88_v16  ;;  %147 = vmatpush.msra.mxu1 %v130_v21  ;;  %v164_v44 = vld [vmem:[#allocation4 + $0x10] sm:$0xff]  ;;  %v122_v45 = vld [vmem:[#allocation6 + $0x8] sm:$0xff]  ;;  %v121_v47 = vld [vmem:[#allocation6] sm:$0xff] }
  0x1d   :  { %188 = vmatpush.msra.mxu2 %v171_v23  ;;  %v163_v46 = vld [vmem:[#allocation4 + $0x8] sm:$0xff]  ;;  %v162_v48 = vld [vmem:[#allocation4] sm:$0xff] }
  0x1e   :  { %108 = vmatpush.msra.mxu0 %v87_v19  ;;  %148 = vmatpush.msra.mxu1 %v129_v24  ;;  %v256_v49 = vld [vmem:[%s434_s2] ss:$0 sm:$0xff] }
  0x1f   :  { %189 = vmatpush.msra.mxu2 %v170_v26  ;;  %v257_v53 = vld [vmem:[%s438_s6] ss:$0 sm:$0xff] }
  0x20   :  { %109 = vmatpush.msra.mxu0 %v86_v22  ;;  %149 = vmatpush.msra.mxu1 %v128_v27  ;;  %v258_v56 = vld [vmem:[%s436_s4] ss:$0 sm:$0xff] }
  0x21   :  { %190 = vmatpush.msra.mxu2 %v169_v29  ;;  %v214_v58 = vld [vmem:[%s439_s7] sm:$0xff] }
  0x22   :  { %110 = vmatpush.msra.mxu0 %v85_v25  ;;  %150 = vmatpush.msra.mxu1 %v127_v30 }
  0x23   :  { %191 = vmatpush.msra.mxu2 %v168_v32 }
  0x24   :  { %111 = vmatpush.msra.mxu0 %v84_v28  ;;  %151 = vmatpush.msra.mxu1 %v126_v33 }
  0x25   :  { %192 = vmatpush.msra.mxu2 %v167_v35 }
  0x26   :  { %112 = vmatpush.msra.mxu0 %v83_v31  ;;  %152 = vmatpush.msra.mxu1 %v125_v36 }
  0x27   :  { %193 = vmatpush.msra.mxu2 %v166_v38 }
  0x28   :  { %113 = vmatpush.msra.mxu0 %v82_v34  ;;  %153 = vmatpush.msra.mxu1 %v124_v39 }
  0x29   :  { %194 = vmatpush.msra.mxu2 %v165_v41 }
  0x2a   :  { %114 = vmatpush.msra.mxu0 %v81_v37  ;;  %154 = vmatpush.msra.mxu1 %v123_v43 }
  0x2b   :  { %195 = vmatpush.msra.mxu2 %v164_v44 }
  0x2c   :  { %115 = vmatpush.msra.mxu0 %v80_v40  ;;  %155 = vmatpush.msra.mxu1 %v122_v45 }
  0x2d   :  { %116 = vmatmul.f32.vlgmr.msra.gmra.mxu0 %v79_v42  ;;  %196 = vmatpush.msra.mxu2 %v163_v46 }
  0x2e   :  { %156 = vmatpush.msra.mxu1 %v121_v47 }
  0x2f   :  { %197 = vmatpush.msra.mxu2 %v162_v48 }
  0xaa   :  { %v117_v50 = vpop.f32.mrf.mxu0 }
  0xab   :  { %v118_v51 = vadd.f32 %v256_v49, %v117_v50 }
  0xad   :  { %v120_v52 = vmax.f32 %v118_v51, 0.0 }
  0xaf   :  { %157 = vmatmul.f32.vlgmr.msra.gmra.mxu1 %v120_v52  ;;  %198 = vmatmul.f32.vlgmr.msra.gmra.mxu2 %v120_v52 }
 0x12c   :  { %v158_v54 = vpop.f32.mrf.mxu1 }
 0x12d   :  { %v159_v55 = vadd.f32 %v257_v53, %v158_v54 }
 0x12f   :  { %161 = vst [vmem:[%s440_s8] sm:$0xff] %v159_v55 }
 0x132   :  { %v199_v57 = vpop.f32.mrf.mxu2 }
 0x133   :  { %v200_v59 = vadd.f32 %v258_v56, %v199_v57 }
 0x135   :  { %v215_v60 = vadd.f32 %v214_v58, %v200_v59 }
 0x137   :  { %218 = vmax.xlane.f32.xlu0 %v215_v60 }
 0x13f   :  { %202 = vmax.xlane.f32.xlu0 %v200_v59 }
 0x1aa   :  { %v219_v63 = vpop.xlane.xlu0 %218 }
 0x1ab   :  { %vm220_vm0 = vcmp.eq.f32.partialorder %v215_v60, %v219_v63 }
 0x1ac   :  { %v221_v0 = vsel %vm220_vm0, %v217_v62, 128 }
 0x1ad   :  { %v223_v1 = vshra.s32 %v221_v0, 16  ;;  %v222_v7 = vand.u32 65535, %v221_v0 }
 0x1af   :  { %v225_v2 = vcvt.s32.f32 %v223_v1  ;;  %v224_v9 = vcvt.s32.f32 %v222_v7 }
 0x1b1   :  { %226 = vmin.xlane.f32.xlu1 %v225_v2 }
 0x1b2   :  { %v203_v3 = vpop.xlane.xlu0 %202 }
 0x1b3   :  { %v204_v4 = vsub.f32 %v200_v59, %v203_v3 }
 0x1b5   :  { %v205_v5 = vmul.f32 1.442695, %v204_v4 }
 0x1b7   :  { %259 = vpow2.f32 %v205_v5 }
 0x1bd   :  { %v260_v6 = vpop.eup %259 }
 0x1be   :  { %207 = vadd.xlane.f32.xlu1 %v260_v6 }
 0x224   :  { %v227_v8 = vpop.xlane.xlu1 %226 }
 0x225   :  { %vm228_vm1 = vcmp.eq.f32.partialorder %v225_v2, %v227_v8  ;;  %v233_v16 = vcvt.f32.s32 %v227_v8 }
 0x226   :  { %v229_v10 = vsel %vm228_vm1, %v224_v9, inf }
 0x227   :  { %230 = vmin.xlane.f32.xlu2 %v229_v10  ;;  %v234_v18 = vshll.u32 %v233_v16, 16 }
 0x231   :  { %v208_v11 = vpop.xlane.xlu1 %207 }
 0x232   :  { %261 = vlog2.f32 %v208_v11 }
 0x238   :  { %v262_v12 = vpop.eup %261 }
 0x239   :  { %v210_v13 = vmul.f32 0.6931472, %v262_v12 }
 0x23b   :  { %v211_v14 = vadd.f32 %v210_v13, %v203_v3 }
 0x23d   :  { %v212_v15 = vsub.f32 %v200_v59, %v211_v14 }
 0x23f   :  { %213 = vst [vmem:[%s441_s9] sm:$0xff] %v212_v15 }
 0x29a   :  { %v231_v17 = vpop.xlane.xlu2 %230 }
 0x29b   :  { %v232_v19 = vcvt.f32.s32 %v231_v17 }
 0x29d   :  { %v235_v20 = vadd.s32 %v234_v18, %v232_v19 }
 0x29f   :  { %236 = vst [vmem:[%s442_s10] sm:$0xff] %v235_v20 }
 0x2a0   :  { %249 = vsyncpa [#allocation3], 1 }
 0x2a1   :  { %250 = vsyncpa [#allocation5], 1 }

</bundles_post_ra>
